<compile_context>
chip_gen: v7x
topology: tpu7x:2x2x1
jax: 0.10.0
libtpu: 0.0.40
codegen_flags: <defaults>
</compile_context>

<pallas_src>
import functools

import jax
import jax.numpy as jnp
import numpy as np
from jax import lax
from jax.experimental import pallas as pl
from jax.experimental.pallas import tpu as pltpu


# ----------------------------------------------------------------------------
# Small helper: row loop (unrolled when short, fori_loop when long)
# ----------------------------------------------------------------------------
def _foreach_row(n_rows, body, unroll_limit=32):
    if n_rows <= unroll_limit:
        for r in range(n_rows):
            body(r)
    else:
        def _body(r, carry):
            body(r)
            return carry
        lax.fori_loop(0, n_rows, _body, 0)


# ----------------------------------------------------------------------------
# Fused kernel: bottom MLP -> embedding gather -> interaction -> top MLP
# ----------------------------------------------------------------------------
def _fused_dlrm_kernel(idx_ref, x_ref, *refs,
                       n_bot, n_top, n_tables, tile_b, pairs,
                       res_ids, hbm_ids):
    """One grid step == one batch tile.

    refs layout (positional):
      n_bot * (W_bot, b_bot),          # (in, out) bf16 / (1, out) f32
      wt1x, w1z_exp, bt1,              # top layer-1: dense part / expanded interaction part
      (n_top - 2) * (W_mid, b_mid),
      w_last, b_last,                  # final layer, kept (out, H) for a transposed matmul
      resident tables (VMEM),
      HBM tables (pl.ANY),
      o_ref,                           # (out_dim, tile_b) lane-dense output block
      emb_buf [, sems]                 # scratch
    """
    has_dma = len(hbm_ids) > 0
    pos = 0
    bot = [(refs[pos + 2 * j], refs[pos + 2 * j + 1]) for j in range(n_bot)]
    pos += 2 * n_bot
    wt1x, w1z_exp, bt1 = refs[pos], refs[pos + 1], refs[pos + 2]
    pos += 3
    n_mid = n_top - 2
    mid = [(refs[pos + 2 * j], refs[pos + 2 * j + 1]) for j in range(n_mid)]
    pos += 2 * n_mid
    w_last, b_last = refs[pos], refs[pos + 1]
    pos += 2
    res_tabs = refs[pos:pos + len(res_ids)]
    pos += len(res_ids)
    hbm_tabs = refs[pos:pos + len(hbm_ids)]
    pos += len(hbm_ids)
    o_ref = refs[pos]
    pos += 1
    emb_buf = refs[pos]
    pos += 1
    sems = refs[pos] if has_dma else None

    # 1) Big (HBM-resident) tables: kick off per-row gather DMAs now so they
    #    overlap with the bottom-MLP compute.  One shared semaphore per table.
    for j, k in enumerate(hbm_ids):
        tab = hbm_tabs[j]

        def _start(r, _tab=tab, _k=k, _j=j):
            row = idx_ref[_k, r]
            pltpu.make_async_copy(_tab.at[pl.ds(row, 1), :],
                                  emb_buf.at[_k, pl.ds(r, 1), :],
                                  sems.at[_j]).start()
        _foreach_row(tile_b, _start)

    # 2) Small (VMEM-resident) tables: gather rows with plain vector loads
    #    (no HBM transactions at all; the one-time table copy was coalesced).
    for j, k in enumerate(res_ids):
        tab = res_tabs[j]

        def _copy(r, _tab=tab, _k=k):
            row = idx_ref[_k, r]
            emb_buf[_k, pl.ds(r, 1), :] = _tab[pl.ds(row, 1), :]
        _foreach_row(tile_b, _copy)

    # 3) Bottom MLP (Linear + ReLU); bf16 MXU operands, f32 accumulate.
    x = x_ref[...]
    for w_ref, b_ref in bot:
        x = jnp.dot(x.astype(jnp.bfloat16), w_ref[...],
                    preferred_element_type=jnp.float32) + b_ref[...]
        x = jnp.maximum(x, 0.0)

    # 4) Wait for the gather DMAs (one wait per issued copy, shared sem/table).
    for j, k in enumerate(hbm_ids):
        tab = hbm_tabs[j]

        def _wait(r, _tab=tab, _k=k, _j=j):
            pltpu.make_async_copy(_tab.at[pl.ds(0, 1), :],
                                  emb_buf.at[_k, pl.ds(r, 1), :],
                                  sems.at[_j]).wait()
        _foreach_row(tile_b, _wait)

    feats = [x] + [emb_buf[k] for k in range(n_tables)]       # each (tile_b, m) f32

    # 5) Top-MLP layer 1 with the pairwise interaction folded in:
    #      cat([x, Zflat]) @ W1t == x @ W1t[:m] + Zflat @ W1t[m:]
    #    and Zflat @ W1t[m:] == prod @ repeat(W1t[m:], m, axis=0)
    #    with prod the lane-dense (tile_b, P*m) pairwise-product slab
    #    => no (B,F,F) bmm, no triangle gather, no concat, one MXU matmul.
    y = jnp.dot(x.astype(jnp.bfloat16), wt1x[...],
                preferred_element_type=jnp.float32) + bt1[...]
    fa = jnp.concatenate([feats[f] for (f, g) in pairs], axis=1)   # (tile_b, P*m)
    fb = jnp.concatenate([feats[g] for (f, g) in pairs], axis=1)   # (tile_b, P*m)
    prod = (fa * fb).astype(jnp.bfloat16)                          # lane-dense VPU
    y = y + jnp.dot(prod, w1z_exp[...], preferred_element_type=jnp.float32)
    y = jnp.maximum(y, 0.0)

    # 6) Remaining hidden top layers (Linear + ReLU).
    for w_ref, b_ref in mid:
        y = jnp.dot(y.astype(jnp.bfloat16), w_ref[...],
                    preferred_element_type=jnp.float32) + b_ref[...]
        y = jnp.maximum(y, 0.0)

    # 7) Final layer computed transposed (out_dim, tile_b): batch lands on the
    #    lane axis so the store is lane-dense; sigmoid at the end.
    logits = lax.dot_general(w_last[...], y.astype(jnp.bfloat16),
                             (((1,), (1,)), ((), ())),
                             preferred_element_type=jnp.float32) + b_last[...]
    o_ref[...] = jax.nn.sigmoid(logits).astype(o_ref.dtype)


# ----------------------------------------------------------------------------
# Wrapper: host-side weight prep + pallas_call
# ----------------------------------------------------------------------------
def dlrm_forward(dense_x, lS_i, bot_params, emb_tables, top_params, *,
                 tile_b=None, table_vmem_budget_bytes=24 << 20):
    B, d0 = dense_x.shape
    K = len(emb_tables)
    m = int(emb_tables[0].shape[1])
    assert int(bot_params[-1][0].shape[0]) == m, "ln_bot[-1] must equal feature_size"
    n_top = len(top_params)
    assert n_top >= 2, "kernel expects at least two top-MLP layers"
    F = 1 + K
    pairs = tuple((f, g) for f in range(F) for g in range(f))   # strict lower triangle
    P = len(pairs)
    H1 = int(top_params[0][0].shape[0])
    out_dim = int(top_params[-1][0].shape[0])

    if tile_b is None:
        # NOTE: prefer 128 on v5e (128x128 MXU); 256 fills the v6e/v7x MXU.
        tile_b = min(256, ((B + 7) // 8) * 8)
    n_tiles = -(-B // tile_b)
    Bp = n_tiles * tile_b

    xd = dense_x.astype(jnp.float32)
    if Bp != B:
        xd = jnp.pad(xd, ((0, Bp - B), (0, 0)))
    idx = jnp.stack([jnp.asarray(ix, jnp.int32) for ix in lS_i], axis=0)   # (K, B)
    if Bp != B:
        idx = jnp.pad(idx, ((0, 0), (0, Bp - B)))      # padded rows look up row 0

    d0_pad = -(-d0 // 8) * 8
    if d0_pad != d0:
        xd = jnp.pad(xd, ((0, 0), (0, d0_pad - d0)))

    # ---- host-side weight prep: transpose ONCE to (in, out); MXU weights -> bf16.
    bot_w = []
    for li, (W, b) in enumerate(bot_params):
        Wt = jnp.asarray(W, jnp.float32).T
        if li == 0 and d0_pad != d0:
            Wt = jnp.pad(Wt, ((0, d0_pad - d0), (0, 0)))
        bot_w.append((Wt.astype(jnp.bfloat16),
                      jnp.asarray(b, jnp.float32).reshape(1, -1)))

    W1, b1 = top_params[0]
    assert int(W1.shape[1]) == m + P, "ln_top[0] must be feature_size + num_interactions"
    W1t = jnp.asarray(W1, jnp.float32).T                       # (m + P, H1)
    wt1x = W1t[:m].astype(jnp.bfloat16)                        # dense part (m, H1)
    # Row-expand the interaction slice so the whole pairwise projection becomes
    # ONE MXU matmul against the lane-dense product slab.
    w1z_exp = jnp.repeat(W1t[m:], m, axis=0).astype(jnp.bfloat16)   # (P*m, H1)
    bt1 = jnp.asarray(b1, jnp.float32).reshape(1, -1)

    mid_w = [(jnp.asarray(W, jnp.float32).T.astype(jnp.bfloat16),
              jnp.asarray(b, jnp.float32).reshape(1, -1))
             for W, b in top_params[1:-1]]
    W_last, b_last = top_params[-1]
    w_last = jnp.asarray(W_last, jnp.float32).astype(jnp.bfloat16)   # (out_dim, H_last)
    b_lastc = jnp.asarray(b_last, jnp.float32).reshape(-1, 1)        # (out_dim, 1)

    # ---- decide per-table: VMEM-resident (vector-load gather) vs HBM (DMA gather).
    tables_f32 = [jnp.asarray(t, jnp.float32) for t in emb_tables]
    res_ids, hbm_ids, used = [], [], 0
    for k, t in enumerate(tables_f32):
        nbytes = int(t.shape[0]) * int(t.shape[1]) * 4
        if used + nbytes <= int(table_vmem_budget_bytes):
            res_ids.append(k)
            used += nbytes
        else:
            hbm_ids.append(k)
    res_ids, hbm_ids = tuple(res_ids), tuple(hbm_ids)

    def _const_spec(a):
        nd = a.ndim
        return pl.BlockSpec(a.shape, lambda i, _nd=nd: (0,) * _nd)

    operands = [idx, xd]
    in_specs = [
        # Per-tile index block lands in SMEM (not a whole-batch scalar prefetch).
        pl.BlockSpec((K, tile_b), lambda i: (0, i),
                     memory_space=pltpu.MemorySpace.SMEM),
        pl.BlockSpec((tile_b, d0_pad), lambda i: (i, 0)),
    ]
    for w, b in bot_w:
        operands += [w, b]
        in_specs += [_const_spec(w), _const_spec(b)]
    operands += [wt1x, w1z_exp, bt1]
    in_specs += [_const_spec(wt1x), _const_spec(w1z_exp), _const_spec(bt1)]
    for w, b in mid_w:
        operands += [w, b]
        in_specs += [_const_spec(w), _const_spec(b)]
    operands += [w_last, b_lastc]
    in_specs += [_const_spec(w_last), _const_spec(b_lastc)]
    for k in res_ids:
        operands.append(tables_f32[k])
        in_specs.append(_const_spec(tables_f32[k]))             # resident in VMEM
    for k in hbm_ids:
        operands.append(tables_f32[k])
        in_specs.append(pl.BlockSpec(memory_space=pl.ANY))      # stays in HBM

    scratch_shapes = [pltpu.VMEM((K, tile_b, m), jnp.float32)]  # gathered rows
    if hbm_ids:
        scratch_shapes.append(pltpu.SemaphoreType.DMA((len(hbm_ids),)))

    # ---- rough VMEM budget; only set an explicit limit for large configs.
    def _nbytes(a):
        return int(np.prod(a.shape)) * a.dtype.itemsize
    resident_bytes = sum(_nbytes(a) for w, b in bot_w for a in (w, b))
    resident_bytes += _nbytes(wt1x) + _nbytes(w1z_exp) + _nbytes(bt1)
    resident_bytes += sum(_nbytes(a) for w, b in mid_w for a in (w, b))
    resident_bytes += _nbytes(w_last) + _nbytes(b_lastc)
    resident_bytes += sum(_nbytes(tables_f32[k]) for k in res_ids)
    est_vmem = (resident_bytes
                + K * tile_b * m * 4                              # emb_buf scratch
                + 2 * tile_b * (d0_pad + out_dim) * 4             # double-buffered x/out tiles
                + 6 * tile_b * max(P * m, H1, 128) * 4)           # fa/fb/prod/y working set
    compiler_kwargs = dict(dimension_semantics=("parallel",))
    if est_vmem > (24 << 20):
        compiler_kwargs["vmem_limit_bytes"] = int(min(est_vmem * 3 // 2 + (4 << 20),
                                                      100 << 20))

    out = pl.pallas_call(
        functools.partial(
            _fused_dlrm_kernel,
            n_bot=len(bot_w), n_top=n_top, n_tables=K, tile_b=tile_b,
            pairs=pairs, res_ids=res_ids, hbm_ids=hbm_ids,
        ),
        out_shape=jax.ShapeDtypeStruct((out_dim, Bp), jnp.float32),
        grid=(n_tiles,),
        in_specs=in_specs,
        out_specs=pl.BlockSpec((out_dim, tile_b), lambda i: (0, i)),
        scratch_shapes=scratch_shapes,
        compiler_params=pltpu.CompilerParams(**compiler_kwargs),
    )(*operands)
    return jnp.transpose(out)[:B]


# ----------------------------------------------------------------------------
# Parameter init (deterministic) + pure-JAX reference for sanity checking
# ----------------------------------------------------------------------------
def init_mlp_params(key, ln):
    params = []
    for i in range(len(ln) - 1):
        n, mm = int(ln[i]), int(ln[i + 1])
        key, kw, kb = jax.random.split(key, 3)
        W = jax.random.normal(kw, (mm, n), jnp.float32) * np.sqrt(2.0 / (mm + n))
        b = jax.random.normal(kb, (mm,), jnp.float32) * np.sqrt(1.0 / mm)
        params.append((W, b))
    return params, key


def init_emb_params(key, feature_size, ln_emb):
    tables = []
    for n in ln_emb:
        key, kt = jax.random.split(key)
        bound = np.sqrt(1.0 / n)
        W = jax.random.uniform(kt, (n, feature_size), jnp.float32,
                               minval=-bound, maxval=bound)
        tables.append(W)
    return tables, key


def dlrm_reference(dense_x, lS_i, bot_params, emb_tables, top_params):
    """Pure-JAX f32 mirror of ELRec_DLRM_Net.sequential_forward."""
    x = dense_x
    for W, b in bot_params:
        x = jnp.maximum(x @ W.T + b, 0.0)
    ly = [tbl[ix] for ix, tbl in zip(lS_i, emb_tables)]
    B, d = x.shape
    T = jnp.concatenate([x] + ly, axis=1).reshape(B, -1, d)
    Z = jnp.einsum("bfd,bgd->bfg", T, T)
    F = T.shape[1]
    li = np.array([i for i in range(F) for j in range(i)])
    lj = np.array([j for i in range(F) for j in range(i)])
    y = jnp.concatenate([x, Z[:, li, lj]], axis=1)
    for i, (W, b) in enumerate(top_params):
        y = y @ W.T + b
        y = jax.nn.sigmoid(y) if i == len(top_params) - 1 else jnp.maximum(y, 0.0)
    return y


# ----------------------------------------------------------------------------
if __name__ == "__main__":
    key = jax.random.PRNGKey(0)

    # Small synthetic DLRM config.
    B = 8
    feature_size = 16                          # embedding dim m (== ln_bot[-1])
    ln_bot = [13, 32, feature_size]            # bottom MLP
    ln_emb = [100, 80, 60]                     # 3 small embedding tables
    num_feat = 1 + len(ln_emb)                 # dense + sparse features
    num_int = num_feat * (num_feat - 1) // 2
    ln_top = [feature_size + num_int, 32, 1]   # top MLP (last layer -> sigmoid)

    bot_params, key = init_mlp_params(key, ln_bot)
    top_params, key = init_mlp_params(key, ln_top)
    emb_tables, key = init_emb_params(key, feature_size, ln_emb)

    key, kx = jax.random.split(key)
    dense_x = jax.random.normal(kx, (B, ln_bot[0]), jnp.float32)

    lS_i = []
    for n in ln_emb:
        key, ki = jax.random.split(key)
        lS_i.append(jax.random.randint(ki, (B,), 0, n, dtype=jnp.int32))

    ref = dlrm_reference(dense_x, lS_i, bot_params, emb_tables, top_params)

    # Path 1: all tables VMEM-resident (coalesced one-time copy, vector-load gather).
    out_res = jax.block_until_ready(
        dlrm_forward(dense_x, lS_i, bot_params, emb_tables, top_params))
    assert out_res.shape == (B, 1) and out_res.dtype == jnp.float32
    assert bool(jnp.all(jnp.isfinite(out_res)))
    np.testing.assert_allclose(np.asarray(out_res), np.asarray(ref),
                               rtol=5e-2, atol=5e-2)

    # Path 2: force the HBM DMA-gather path (what over-budget tables would use).
    out_dma = jax.block_until_ready(
        dlrm_forward(dense_x, lS_i, bot_params, emb_tables, top_params,
                     table_vmem_budget_bytes=0))
    assert out_dma.shape == (B, 1)
    np.testing.assert_allclose(np.asarray(out_dma), np.asarray(ref),
                               rtol=5e-2, atol=5e-2)

    print("KERNEL_OK")
</pallas_src>

<mosaic_0001>
module attributes {stable_mosaic.version = 11 : i64} {
  func.func @_fused_dlrm_kernel(%arg0: i32, %arg1: memref<3x8xi32, #tpu.memory_space<smem>>, %arg2: memref<8x16xf32, #tpu.memory_space<vmem>>, %arg3: memref<16x32xbf16, #tpu.memory_space<vmem>>, %arg4: memref<1x32xf32, #tpu.memory_space<vmem>>, %arg5: memref<32x16xbf16, #tpu.memory_space<vmem>>, %arg6: memref<1x16xf32, #tpu.memory_space<vmem>>, %arg7: memref<16x32xbf16, #tpu.memory_space<vmem>>, %arg8: memref<96x32xbf16, #tpu.memory_space<vmem>>, %arg9: memref<1x32xf32, #tpu.memory_space<vmem>>, %arg10: memref<1x32xbf16, #tpu.memory_space<vmem>>, %arg11: memref<1x1xf32, #tpu.memory_space<vmem>>, %arg12: memref<100x16xf32, #tpu.memory_space<vmem>>, %arg13: memref<80x16xf32, #tpu.memory_space<vmem>>, %arg14: memref<60x16xf32, #tpu.memory_space<vmem>>, %arg15: memref<1x8xf32, #tpu.memory_space<vmem>>, %arg16: memref<3x8x16xf32, #tpu.memory_space<vmem>>) attributes {dimension_semantics = [#tpu.dimension_semantics<parallel>], iteration_bounds = array<i64: 1>, scalar_prefetch = 0 : i64, scratch_operands = 1 : i64, tpu.core_type = #tpu.core_type<tc>, window_params = [{transform_indices = @transform_0, window_bounds = array<i64: 3, 8>}, {transform_indices = @transform_1, window_bounds = array<i64: 8, 16>}, {pipeline_mode = #tpu.pipeline_mode<synchronous>, transform_indices = @transform_2, window_bounds = array<i64: 16, 32>}, {pipeline_mode = #tpu.pipeline_mode<synchronous>, transform_indices = @transform_3, window_bounds = array<i64: 1, 32>}, {pipeline_mode = #tpu.pipeline_mode<synchronous>, transform_indices = @transform_4, window_bounds = array<i64: 32, 16>}, {pipeline_mode = #tpu.pipeline_mode<synchronous>, transform_indices = @transform_5, window_bounds = array<i64: 1, 16>}, {pipeline_mode = #tpu.pipeline_mode<synchronous>, transform_indices = @transform_6, window_bounds = array<i64: 16, 32>}, {pipeline_mode = #tpu.pipeline_mode<synchronous>, transform_indices = @transform_7, window_bounds = array<i64: 96, 32>}, {pipeline_mode = #tpu.pipeline_mode<synchronous>, transform_indices = @transform_8, window_bounds = array<i64: 1, 32>}, {pipeline_mode = #tpu.pipeline_mode<synchronous>, transform_indices = @transform_9, window_bounds = array<i64: 1, 32>}, {pipeline_mode = #tpu.pipeline_mode<synchronous>, transform_indices = @transform_10, window_bounds = array<i64: 1, 1>}, {pipeline_mode = #tpu.pipeline_mode<synchronous>, transform_indices = @transform_11, window_bounds = array<i64: 100, 16>}, {pipeline_mode = #tpu.pipeline_mode<synchronous>, transform_indices = @transform_12, window_bounds = array<i64: 80, 16>}, {pipeline_mode = #tpu.pipeline_mode<synchronous>, transform_indices = @transform_13, window_bounds = array<i64: 60, 16>}, {transform_indices = @transform_14, window_bounds = array<i64: 1, 8>}]} {
    %c0 = arith.constant 0 : index
    %c0_0 = arith.constant 0 : index
    %0 = memref.load %arg1[%c0, %c0_0] : memref<3x8xi32, #tpu.memory_space<smem>>
    %1 = arith.index_cast %0 : i32 to index
    %c0_1 = arith.constant 0 : index
    %2 = vector.load %arg12[%1, %c0_1] : memref<100x16xf32, #tpu.memory_space<vmem>>, vector<1x16xf32>
    %c0_2 = arith.constant 0 : index
    %c0_3 = arith.constant 0 : index
    %c0_4 = arith.constant 0 : index
    %3 = vector.load %arg16[%c0_2, %c0_3, %c0_4] : memref<3x8x16xf32, #tpu.memory_space<vmem>>, vector<1x1x16xf32>
    %4 = vector.shape_cast %3 : vector<1x1x16xf32> to vector<1x16xf32>
    %5 = vector.shape_cast %2 : vector<1x16xf32> to vector<1x1x16xf32>
    tpu.vector_store %arg16[%c0_2, %c0_3, %c0_4], %5 {strides = array<i32>} : memref<3x8x16xf32, #tpu.memory_space<vmem>>, vector<1x1x16xf32>,
    %c0_5 = arith.constant 0 : index
    %c1 = arith.constant 1 : index
    %6 = memref.load %arg1[%c0_5, %c1] : memref<3x8xi32, #tpu.memory_space<smem>>
    %7 = arith.index_cast %6 : i32 to index
    %c0_6 = arith.constant 0 : index
    %8 = vector.load %arg12[%7, %c0_6] : memref<100x16xf32, #tpu.memory_space<vmem>>, vector<1x16xf32>
    %c0_7 = arith.constant 0 : index
    %c1_8 = arith.constant 1 : index
    %c0_9 = arith.constant 0 : index
    %9 = vector.load %arg16[%c0_7, %c1_8, %c0_9] : memref<3x8x16xf32, #tpu.memory_space<vmem>>, vector<1x1x16xf32>
    %10 = vector.shape_cast %9 : vector<1x1x16xf32> to vector<1x16xf32>
    %11 = vector.shape_cast %8 : vector<1x16xf32> to vector<1x1x16xf32>
    tpu.vector_store %arg16[%c0_7, %c1_8, %c0_9], %11 {strides = array<i32>} : memref<3x8x16xf32, #tpu.memory_space<vmem>>, vector<1x1x16xf32>,
    %c0_10 = arith.constant 0 : index
    %c2 = arith.constant 2 : index
    %12 = memref.load %arg1[%c0_10, %c2] : memref<3x8xi32, #tpu.memory_space<smem>>
    %13 = arith.index_cast %12 : i32 to index
    %c0_11 = arith.constant 0 : index
    %14 = vector.load %arg12[%13, %c0_11] : memref<100x16xf32, #tpu.memory_space<vmem>>, vector<1x16xf32>
    %c0_12 = arith.constant 0 : index
    %c2_13 = arith.constant 2 : index
    %c0_14 = arith.constant 0 : index
    %15 = vector.load %arg16[%c0_12, %c2_13, %c0_14] : memref<3x8x16xf32, #tpu.memory_space<vmem>>, vector<1x1x16xf32>
    %16 = vector.shape_cast %15 : vector<1x1x16xf32> to vector<1x16xf32>
    %17 = vector.shape_cast %14 : vector<1x16xf32> to vector<1x1x16xf32>
    tpu.vector_store %arg16[%c0_12, %c2_13, %c0_14], %17 {strides = array<i32>} : memref<3x8x16xf32, #tpu.memory_space<vmem>>, vector<1x1x16xf32>,
    %c0_15 = arith.constant 0 : index
    %c3 = arith.constant 3 : index
    %18 = memref.load %arg1[%c0_15, %c3] : memref<3x8xi32, #tpu.memory_space<smem>>
    %19 = arith.index_cast %18 : i32 to index
    %c0_16 = arith.constant 0 : index
    %20 = vector.load %arg12[%19, %c0_16] : memref<100x16xf32, #tpu.memory_space<vmem>>, vector<1x16xf32>
    %c0_17 = arith.constant 0 : index
    %c3_18 = arith.constant 3 : index
    %c0_19 = arith.constant 0 : index
    %21 = vector.load %arg16[%c0_17, %c3_18, %c0_19] : memref<3x8x16xf32, #tpu.memory_space<vmem>>, vector<1x1x16xf32>
    %22 = vector.shape_cast %21 : vector<1x1x16xf32> to vector<1x16xf32>
    %23 = vector.shape_cast %20 : vector<1x16xf32> to vector<1x1x16xf32>
    tpu.vector_store %arg16[%c0_17, %c3_18, %c0_19], %23 {strides = array<i32>} : memref<3x8x16xf32, #tpu.memory_space<vmem>>, vector<1x1x16xf32>,
    %c0_20 = arith.constant 0 : index
    %c4 = arith.constant 4 : index
    %24 = memref.load %arg1[%c0_20, %c4] : memref<3x8xi32, #tpu.memory_space<smem>>
    %25 = arith.index_cast %24 : i32 to index
    %c0_21 = arith.constant 0 : index
    %26 = vector.load %arg12[%25, %c0_21] : memref<100x16xf32, #tpu.memory_space<vmem>>, vector<1x16xf32>
    %c0_22 = arith.constant 0 : index
    %c4_23 = arith.constant 4 : index
    %c0_24 = arith.constant 0 : index
    %27 = vector.load %arg16[%c0_22, %c4_23, %c0_24] : memref<3x8x16xf32, #tpu.memory_space<vmem>>, vector<1x1x16xf32>
    %28 = vector.shape_cast %27 : vector<1x1x16xf32> to vector<1x16xf32>
    %29 = vector.shape_cast %26 : vector<1x16xf32> to vector<1x1x16xf32>
    tpu.vector_store %arg16[%c0_22, %c4_23, %c0_24], %29 {strides = array<i32>} : memref<3x8x16xf32, #tpu.memory_space<vmem>>, vector<1x1x16xf32>,
    %c0_25 = arith.constant 0 : index
    %c5 = arith.constant 5 : index
    %30 = memref.load %arg1[%c0_25, %c5] : memref<3x8xi32, #tpu.memory_space<smem>>
    %31 = arith.index_cast %30 : i32 to index
    %c0_26 = arith.constant 0 : index
    %32 = vector.load %arg12[%31, %c0_26] : memref<100x16xf32, #tpu.memory_space<vmem>>, vector<1x16xf32>
    %c0_27 = arith.constant 0 : index
    %c5_28 = arith.constant 5 : index
    %c0_29 = arith.constant 0 : index
    %33 = vector.load %arg16[%c0_27, %c5_28, %c0_29] : memref<3x8x16xf32, #tpu.memory_space<vmem>>, vector<1x1x16xf32>
    %34 = vector.shape_cast %33 : vector<1x1x16xf32> to vector<1x16xf32>
    %35 = vector.shape_cast %32 : vector<1x16xf32> to vector<1x1x16xf32>
    tpu.vector_store %arg16[%c0_27, %c5_28, %c0_29], %35 {strides = array<i32>} : memref<3x8x16xf32, #tpu.memory_space<vmem>>, vector<1x1x16xf32>,
    %c0_30 = arith.constant 0 : index
    %c6 = arith.constant 6 : index
    %36 = memref.load %arg1[%c0_30, %c6] : memref<3x8xi32, #tpu.memory_space<smem>>
    %37 = arith.index_cast %36 : i32 to index
    %c0_31 = arith.constant 0 : index
    %38 = vector.load %arg12[%37, %c0_31] : memref<100x16xf32, #tpu.memory_space<vmem>>, vector<1x16xf32>
    %c0_32 = arith.constant 0 : index
    %c6_33 = arith.constant 6 : index
    %c0_34 = arith.constant 0 : index
    %39 = vector.load %arg16[%c0_32, %c6_33, %c0_34] : memref<3x8x16xf32, #tpu.memory_space<vmem>>, vector<1x1x16xf32>
    %40 = vector.shape_cast %39 : vector<1x1x16xf32> to vector<1x16xf32>
    %41 = vector.shape_cast %38 : vector<1x16xf32> to vector<1x1x16xf32>
    tpu.vector_store %arg16[%c0_32, %c6_33, %c0_34], %41 {strides = array<i32>} : memref<3x8x16xf32, #tpu.memory_space<vmem>>, vector<1x1x16xf32>,
    %c0_35 = arith.constant 0 : index
    %c7 = arith.constant 7 : index
    %42 = memref.load %arg1[%c0_35, %c7] : memref<3x8xi32, #tpu.memory_space<smem>>
    %43 = arith.index_cast %42 : i32 to index
    %c0_36 = arith.constant 0 : index
    %44 = vector.load %arg12[%43, %c0_36] : memref<100x16xf32, #tpu.memory_space<vmem>>, vector<1x16xf32>
    %c0_37 = arith.constant 0 : index
    %c7_38 = arith.constant 7 : index
    %c0_39 = arith.constant 0 : index
    %45 = vector.load %arg16[%c0_37, %c7_38, %c0_39] : memref<3x8x16xf32, #tpu.memory_space<vmem>>, vector<1x1x16xf32>
    %46 = vector.shape_cast %45 : vector<1x1x16xf32> to vector<1x16xf32>
    %47 = vector.shape_cast %44 : vector<1x16xf32> to vector<1x1x16xf32>
    tpu.vector_store %arg16[%c0_37, %c7_38, %c0_39], %47 {strides = array<i32>} : memref<3x8x16xf32, #tpu.memory_space<vmem>>, vector<1x1x16xf32>,
    %c1_40 = arith.constant 1 : index
    %c0_41 = arith.constant 0 : index
    %48 = memref.load %arg1[%c1_40, %c0_41] : memref<3x8xi32, #tpu.memory_space<smem>>
    %49 = arith.index_cast %48 : i32 to index
    %c0_42 = arith.constant 0 : index
    %50 = vector.load %arg13[%49, %c0_42] : memref<80x16xf32, #tpu.memory_space<vmem>>, vector<1x16xf32>
    %c1_43 = arith.constant 1 : index
    %c0_44 = arith.constant 0 : index
    %c0_45 = arith.constant 0 : index
    %51 = vector.load %arg16[%c1_43, %c0_44, %c0_45] : memref<3x8x16xf32, #tpu.memory_space<vmem>>, vector<1x1x16xf32>
    %52 = vector.shape_cast %51 : vector<1x1x16xf32> to vector<1x16xf32>
    %53 = vector.shape_cast %50 : vector<1x16xf32> to vector<1x1x16xf32>
    tpu.vector_store %arg16[%c1_43, %c0_44, %c0_45], %53 {strides = array<i32>} : memref<3x8x16xf32, #tpu.memory_space<vmem>>, vector<1x1x16xf32>,
    %c1_46 = arith.constant 1 : index
    %c1_47 = arith.constant 1 : index
    %54 = memref.load %arg1[%c1_46, %c1_47] : memref<3x8xi32, #tpu.memory_space<smem>>
    %55 = arith.index_cast %54 : i32 to index
    %c0_48 = arith.constant 0 : index
    %56 = vector.load %arg13[%55, %c0_48] : memref<80x16xf32, #tpu.memory_space<vmem>>, vector<1x16xf32>
    %c1_49 = arith.constant 1 : index
    %c1_50 = arith.constant 1 : index
    %c0_51 = arith.constant 0 : index
    %57 = vector.load %arg16[%c1_49, %c1_50, %c0_51] : memref<3x8x16xf32, #tpu.memory_space<vmem>>, vector<1x1x16xf32>
    %58 = vector.shape_cast %57 : vector<1x1x16xf32> to vector<1x16xf32>
    %59 = vector.shape_cast %56 : vector<1x16xf32> to vector<1x1x16xf32>
    tpu.vector_store %arg16[%c1_49, %c1_50, %c0_51], %59 {strides = array<i32>} : memref<3x8x16xf32, #tpu.memory_space<vmem>>, vector<1x1x16xf32>,
    %c1_52 = arith.constant 1 : index
    %c2_53 = arith.constant 2 : index
    %60 = memref.load %arg1[%c1_52, %c2_53] : memref<3x8xi32, #tpu.memory_space<smem>>
    %61 = arith.index_cast %60 : i32 to index
    %c0_54 = arith.constant 0 : index
    %62 = vector.load %arg13[%61, %c0_54] : memref<80x16xf32, #tpu.memory_space<vmem>>, vector<1x16xf32>
    %c1_55 = arith.constant 1 : index
    %c2_56 = arith.constant 2 : index
    %c0_57 = arith.constant 0 : index
    %63 = vector.load %arg16[%c1_55, %c2_56, %c0_57] : memref<3x8x16xf32, #tpu.memory_space<vmem>>, vector<1x1x16xf32>
    %64 = vector.shape_cast %63 : vector<1x1x16xf32> to vector<1x16xf32>
    %65 = vector.shape_cast %62 : vector<1x16xf32> to vector<1x1x16xf32>
    tpu.vector_store %arg16[%c1_55, %c2_56, %c0_57], %65 {strides = array<i32>} : memref<3x8x16xf32, #tpu.memory_space<vmem>>, vector<1x1x16xf32>,
    %c1_58 = arith.constant 1 : index
    %c3_59 = arith.constant 3 : index
    %66 = memref.load %arg1[%c1_58, %c3_59] : memref<3x8xi32, #tpu.memory_space<smem>>
    %67 = arith.index_cast %66 : i32 to index
    %c0_60 = arith.constant 0 : index
    %68 = vector.load %arg13[%67, %c0_60] : memref<80x16xf32, #tpu.memory_space<vmem>>, vector<1x16xf32>
    %c1_61 = arith.constant 1 : index
    %c3_62 = arith.constant 3 : index
    %c0_63 = arith.constant 0 : index
    %69 = vector.load %arg16[%c1_61, %c3_62, %c0_63] : memref<3x8x16xf32, #tpu.memory_space<vmem>>, vector<1x1x16xf32>
    %70 = vector.shape_cast %69 : vector<1x1x16xf32> to vector<1x16xf32>
    %71 = vector.shape_cast %68 : vector<1x16xf32> to vector<1x1x16xf32>
    tpu.vector_store %arg16[%c1_61, %c3_62, %c0_63], %71 {strides = array<i32>} : memref<3x8x16xf32, #tpu.memory_space<vmem>>, vector<1x1x16xf32>,
    %c1_64 = arith.constant 1 : index
    %c4_65 = arith.constant 4 : index
    %72 = memref.load %arg1[%c1_64, %c4_65] : memref<3x8xi32, #tpu.memory_space<smem>>
    %73 = arith.index_cast %72 : i32 to index
    %c0_66 = arith.constant 0 : index
    %74 = vector.load %arg13[%73, %c0_66] : memref<80x16xf32, #tpu.memory_space<vmem>>, vector<1x16xf32>
    %c1_67 = arith.constant 1 : index
    %c4_68 = arith.constant 4 : index
    %c0_69 = arith.constant 0 : index
    %75 = vector.load %arg16[%c1_67, %c4_68, %c0_69] : memref<3x8x16xf32, #tpu.memory_space<vmem>>, vector<1x1x16xf32>
    %76 = vector.shape_cast %75 : vector<1x1x16xf32> to vector<1x16xf32>
    %77 = vector.shape_cast %74 : vector<1x16xf32> to vector<1x1x16xf32>
    tpu.vector_store %arg16[%c1_67, %c4_68, %c0_69], %77 {strides = array<i32>} : memref<3x8x16xf32, #tpu.memory_space<vmem>>, vector<1x1x16xf32>,
    %c1_70 = arith.constant 1 : index
    %c5_71 = arith.constant 5 : index
    %78 = memref.load %arg1[%c1_70, %c5_71] : memref<3x8xi32, #tpu.memory_space<smem>>
    %79 = arith.index_cast %78 : i32 to index
    %c0_72 = arith.constant 0 : index
    %80 = vector.load %arg13[%79, %c0_72] : memref<80x16xf32, #tpu.memory_space<vmem>>, vector<1x16xf32>
    %c1_73 = arith.constant 1 : index
    %c5_74 = arith.constant 5 : index
    %c0_75 = arith.constant 0 : index
    %81 = vector.load %arg16[%c1_73, %c5_74, %c0_75] : memref<3x8x16xf32, #tpu.memory_space<vmem>>, vector<1x1x16xf32>
    %82 = vector.shape_cast %81 : vector<1x1x16xf32> to vector<1x16xf32>
    %83 = vector.shape_cast %80 : vector<1x16xf32> to vector<1x1x16xf32>
    tpu.vector_store %arg16[%c1_73, %c5_74, %c0_75], %83 {strides = array<i32>} : memref<3x8x16xf32, #tpu.memory_space<vmem>>, vector<1x1x16xf32>,
    %c1_76 = arith.constant 1 : index
    %c6_77 = arith.constant 6 : index
    %84 = memref.load %arg1[%c1_76, %c6_77] : memref<3x8xi32, #tpu.memory_space<smem>>
    %85 = arith.index_cast %84 : i32 to index
    %c0_78 = arith.constant 0 : index
    %86 = vector.load %arg13[%85, %c0_78] : memref<80x16xf32, #tpu.memory_space<vmem>>, vector<1x16xf32>
    %c1_79 = arith.constant 1 : index
    %c6_80 = arith.constant 6 : index
    %c0_81 = arith.constant 0 : index
    %87 = vector.load %arg16[%c1_79, %c6_80, %c0_81] : memref<3x8x16xf32, #tpu.memory_space<vmem>>, vector<1x1x16xf32>
    %88 = vector.shape_cast %87 : vector<1x1x16xf32> to vector<1x16xf32>
    %89 = vector.shape_cast %86 : vector<1x16xf32> to vector<1x1x16xf32>
    tpu.vector_store %arg16[%c1_79, %c6_80, %c0_81], %89 {strides = array<i32>} : memref<3x8x16xf32, #tpu.memory_space<vmem>>, vector<1x1x16xf32>,
    %c1_82 = arith.constant 1 : index
    %c7_83 = arith.constant 7 : index
    %90 = memref.load %arg1[%c1_82, %c7_83] : memref<3x8xi32, #tpu.memory_space<smem>>
    %91 = arith.index_cast %90 : i32 to index
    %c0_84 = arith.constant 0 : index
    %92 = vector.load %arg13[%91, %c0_84] : memref<80x16xf32, #tpu.memory_space<vmem>>, vector<1x16xf32>
    %c1_85 = arith.constant 1 : index
    %c7_86 = arith.constant 7 : index
    %c0_87 = arith.constant 0 : index
    %93 = vector.load %arg16[%c1_85, %c7_86, %c0_87] : memref<3x8x16xf32, #tpu.memory_space<vmem>>, vector<1x1x16xf32>
    %94 = vector.shape_cast %93 : vector<1x1x16xf32> to vector<1x16xf32>
    %95 = vector.shape_cast %92 : vector<1x16xf32> to vector<1x1x16xf32>
    tpu.vector_store %arg16[%c1_85, %c7_86, %c0_87], %95 {strides = array<i32>} : memref<3x8x16xf32, #tpu.memory_space<vmem>>, vector<1x1x16xf32>,
    %c2_88 = arith.constant 2 : index
    %c0_89 = arith.constant 0 : index
    %96 = memref.load %arg1[%c2_88, %c0_89] : memref<3x8xi32, #tpu.memory_space<smem>>
    %97 = arith.index_cast %96 : i32 to index
    %c0_90 = arith.constant 0 : index
    %98 = vector.load %arg14[%97, %c0_90] : memref<60x16xf32, #tpu.memory_space<vmem>>, vector<1x16xf32>
    %c2_91 = arith.constant 2 : index
    %c0_92 = arith.constant 0 : index
    %c0_93 = arith.constant 0 : index
    %99 = vector.load %arg16[%c2_91, %c0_92, %c0_93] : memref<3x8x16xf32, #tpu.memory_space<vmem>>, vector<1x1x16xf32>
    %100 = vector.shape_cast %99 : vector<1x1x16xf32> to vector<1x16xf32>
    %101 = vector.shape_cast %98 : vector<1x16xf32> to vector<1x1x16xf32>
    tpu.vector_store %arg16[%c2_91, %c0_92, %c0_93], %101 {strides = array<i32>} : memref<3x8x16xf32, #tpu.memory_space<vmem>>, vector<1x1x16xf32>,
    %c2_94 = arith.constant 2 : index
    %c1_95 = arith.constant 1 : index
    %102 = memref.load %arg1[%c2_94, %c1_95] : memref<3x8xi32, #tpu.memory_space<smem>>
    %103 = arith.index_cast %102 : i32 to index
    %c0_96 = arith.constant 0 : index
    %104 = vector.load %arg14[%103, %c0_96] : memref<60x16xf32, #tpu.memory_space<vmem>>, vector<1x16xf32>
    %c2_97 = arith.constant 2 : index
    %c1_98 = arith.constant 1 : index
    %c0_99 = arith.constant 0 : index
    %105 = vector.load %arg16[%c2_97, %c1_98, %c0_99] : memref<3x8x16xf32, #tpu.memory_space<vmem>>, vector<1x1x16xf32>
    %106 = vector.shape_cast %105 : vector<1x1x16xf32> to vector<1x16xf32>
    %107 = vector.shape_cast %104 : vector<1x16xf32> to vector<1x1x16xf32>
    tpu.vector_store %arg16[%c2_97, %c1_98, %c0_99], %107 {strides = array<i32>} : memref<3x8x16xf32, #tpu.memory_space<vmem>>, vector<1x1x16xf32>,
    %c2_100 = arith.constant 2 : index
    %c2_101 = arith.constant 2 : index
    %108 = memref.load %arg1[%c2_100, %c2_101] : memref<3x8xi32, #tpu.memory_space<smem>>
    %109 = arith.index_cast %108 : i32 to index
    %c0_102 = arith.constant 0 : index
    %110 = vector.load %arg14[%109, %c0_102] : memref<60x16xf32, #tpu.memory_space<vmem>>, vector<1x16xf32>
    %c2_103 = arith.constant 2 : index
    %c2_104 = arith.constant 2 : index
    %c0_105 = arith.constant 0 : index
    %111 = vector.load %arg16[%c2_103, %c2_104, %c0_105] : memref<3x8x16xf32, #tpu.memory_space<vmem>>, vector<1x1x16xf32>
    %112 = vector.shape_cast %111 : vector<1x1x16xf32> to vector<1x16xf32>
    %113 = vector.shape_cast %110 : vector<1x16xf32> to vector<1x1x16xf32>
    tpu.vector_store %arg16[%c2_103, %c2_104, %c0_105], %113 {strides = array<i32>} : memref<3x8x16xf32, #tpu.memory_space<vmem>>, vector<1x1x16xf32>,
    %c2_106 = arith.constant 2 : index
    %c3_107 = arith.constant 3 : index
    %114 = memref.load %arg1[%c2_106, %c3_107] : memref<3x8xi32, #tpu.memory_space<smem>>
    %115 = arith.index_cast %114 : i32 to index
    %c0_108 = arith.constant 0 : index
    %116 = vector.load %arg14[%115, %c0_108] : memref<60x16xf32, #tpu.memory_space<vmem>>, vector<1x16xf32>
    %c2_109 = arith.constant 2 : index
    %c3_110 = arith.constant 3 : index
    %c0_111 = arith.constant 0 : index
    %117 = vector.load %arg16[%c2_109, %c3_110, %c0_111] : memref<3x8x16xf32, #tpu.memory_space<vmem>>, vector<1x1x16xf32>
    %118 = vector.shape_cast %117 : vector<1x1x16xf32> to vector<1x16xf32>
    %119 = vector.shape_cast %116 : vector<1x16xf32> to vector<1x1x16xf32>
    tpu.vector_store %arg16[%c2_109, %c3_110, %c0_111], %119 {strides = array<i32>} : memref<3x8x16xf32, #tpu.memory_space<vmem>>, vector<1x1x16xf32>,
    %c2_112 = arith.constant 2 : index
    %c4_113 = arith.constant 4 : index
    %120 = memref.load %arg1[%c2_112, %c4_113] : memref<3x8xi32, #tpu.memory_space<smem>>
    %121 = arith.index_cast %120 : i32 to index
    %c0_114 = arith.constant 0 : index
    %122 = vector.load %arg14[%121, %c0_114] : memref<60x16xf32, #tpu.memory_space<vmem>>, vector<1x16xf32>
    %c2_115 = arith.constant 2 : index
    %c4_116 = arith.constant 4 : index
    %c0_117 = arith.constant 0 : index
    %123 = vector.load %arg16[%c2_115, %c4_116, %c0_117] : memref<3x8x16xf32, #tpu.memory_space<vmem>>, vector<1x1x16xf32>
    %124 = vector.shape_cast %123 : vector<1x1x16xf32> to vector<1x16xf32>
    %125 = vector.shape_cast %122 : vector<1x16xf32> to vector<1x1x16xf32>
    tpu.vector_store %arg16[%c2_115, %c4_116, %c0_117], %125 {strides = array<i32>} : memref<3x8x16xf32, #tpu.memory_space<vmem>>, vector<1x1x16xf32>,
    %c2_118 = arith.constant 2 : index
    %c5_119 = arith.constant 5 : index
    %126 = memref.load %arg1[%c2_118, %c5_119] : memref<3x8xi32, #tpu.memory_space<smem>>
    %127 = arith.index_cast %126 : i32 to index
    %c0_120 = arith.constant 0 : index
    %128 = vector.load %arg14[%127, %c0_120] : memref<60x16xf32, #tpu.memory_space<vmem>>, vector<1x16xf32>
    %c2_121 = arith.constant 2 : index
    %c5_122 = arith.constant 5 : index
    %c0_123 = arith.constant 0 : index
    %129 = vector.load %arg16[%c2_121, %c5_122, %c0_123] : memref<3x8x16xf32, #tpu.memory_space<vmem>>, vector<1x1x16xf32>
    %130 = vector.shape_cast %129 : vector<1x1x16xf32> to vector<1x16xf32>
    %131 = vector.shape_cast %128 : vector<1x16xf32> to vector<1x1x16xf32>
    tpu.vector_store %arg16[%c2_121, %c5_122, %c0_123], %131 {strides = array<i32>} : memref<3x8x16xf32, #tpu.memory_space<vmem>>, vector<1x1x16xf32>,
    %c2_124 = arith.constant 2 : index
    %c6_125 = arith.constant 6 : index
    %132 = memref.load %arg1[%c2_124, %c6_125] : memref<3x8xi32, #tpu.memory_space<smem>>
    %133 = arith.index_cast %132 : i32 to index
    %c0_126 = arith.constant 0 : index
    %134 = vector.load %arg14[%133, %c0_126] : memref<60x16xf32, #tpu.memory_space<vmem>>, vector<1x16xf32>
    %c2_127 = arith.constant 2 : index
    %c6_128 = arith.constant 6 : index
    %c0_129 = arith.constant 0 : index
    %135 = vector.load %arg16[%c2_127, %c6_128, %c0_129] : memref<3x8x16xf32, #tpu.memory_space<vmem>>, vector<1x1x16xf32>
    %136 = vector.shape_cast %135 : vector<1x1x16xf32> to vector<1x16xf32>
    %137 = vector.shape_cast %134 : vector<1x16xf32> to vector<1x1x16xf32>
    tpu.vector_store %arg16[%c2_127, %c6_128, %c0_129], %137 {strides = array<i32>} : memref<3x8x16xf32, #tpu.memory_space<vmem>>, vector<1x1x16xf32>,
    %c2_130 = arith.constant 2 : index
    %c7_131 = arith.constant 7 : index
    %138 = memref.load %arg1[%c2_130, %c7_131] : memref<3x8xi32, #tpu.memory_space<smem>>
    %139 = arith.index_cast %138 : i32 to index
    %c0_132 = arith.constant 0 : index
    %140 = vector.load %arg14[%139, %c0_132] : memref<60x16xf32, #tpu.memory_space<vmem>>, vector<1x16xf32>
    %c2_133 = arith.constant 2 : index
    %c7_134 = arith.constant 7 : index
    %c0_135 = arith.constant 0 : index
    %141 = vector.load %arg16[%c2_133, %c7_134, %c0_135] : memref<3x8x16xf32, #tpu.memory_space<vmem>>, vector<1x1x16xf32>
    %142 = vector.shape_cast %141 : vector<1x1x16xf32> to vector<1x16xf32>
    %143 = vector.shape_cast %140 : vector<1x16xf32> to vector<1x1x16xf32>
    tpu.vector_store %arg16[%c2_133, %c7_134, %c0_135], %143 {strides = array<i32>} : memref<3x8x16xf32, #tpu.memory_space<vmem>>, vector<1x1x16xf32>,
    %c0_136 = arith.constant 0 : index
    %c0_137 = arith.constant 0 : index
    %144 = vector.load %arg2[%c0_136, %c0_137] : memref<8x16xf32, #tpu.memory_space<vmem>>, vector<8x16xf32>
    %145 = arith.truncf %144 : vector<8x16xf32> to vector<8x16xbf16>
    %c0_138 = arith.constant 0 : index
    %c0_139 = arith.constant 0 : index
    %146 = vector.load %arg3[%c0_138, %c0_139] : memref<16x32xbf16, #tpu.memory_space<vmem>>, vector<16x32xbf16>
    %cst = arith.constant dense<0.000000e+00> : vector<8x32xf32>
    %147 = tpu.matmul %145, %146, %cst {dimension_numbers = #tpu.dot_dimension_numbers<[1], [0], [0], [1], [0, 0, 1, 1], [], []>} : vector<8x16xbf16>, vector<16x32xbf16>, vector<8x32xf32> -> vector<8x32xf32>
    %c0_140 = arith.constant 0 : index
    %c0_141 = arith.constant 0 : index
    %148 = vector.load %arg4[%c0_140, %c0_141] : memref<1x32xf32, #tpu.memory_space<vmem>>, vector<1x32xf32>
    %149 = vector.broadcast %148 : vector<1x32xf32> to vector<8x32xf32>
    %150 = arith.addf %147, %149 : vector<8x32xf32>
    %cst_142 = arith.constant 0.000000e+00 : f32
    %151 = vector.broadcast %cst_142 : f32 to vector<8x32xf32>
    %152 = arith.maximumf %150, %151 : vector<8x32xf32>
    %153 = arith.truncf %152 : vector<8x32xf32> to vector<8x32xbf16>
    %c0_143 = arith.constant 0 : index
    %c0_144 = arith.constant 0 : index
    %154 = vector.load %arg5[%c0_143, %c0_144] : memref<32x16xbf16, #tpu.memory_space<vmem>>, vector<32x16xbf16>
    %cst_145 = arith.constant dense<0.000000e+00> : vector<8x16xf32>
    %155 = tpu.matmul %153, %154, %cst_145 {dimension_numbers = #tpu.dot_dimension_numbers<[1], [0], [0], [1], [0, 0, 1, 1], [], []>} : vector<8x32xbf16>, vector<32x16xbf16>, vector<8x16xf32> -> vector<8x16xf32>
    %c0_146 = arith.constant 0 : index
    %c0_147 = arith.constant 0 : index
    %156 = vector.load %arg6[%c0_146, %c0_147] : memref<1x16xf32, #tpu.memory_space<vmem>>, vector<1x16xf32>
    %157 = vector.broadcast %156 : vector<1x16xf32> to vector<8x16xf32>
    %158 = arith.addf %155, %157 : vector<8x16xf32>
    %cst_148 = arith.constant 0.000000e+00 : f32
    %159 = vector.broadcast %cst_148 : f32 to vector<8x16xf32>
    %160 = arith.maximumf %158, %159 : vector<8x16xf32>
    %c0_149 = arith.constant 0 : index
    %c0_150 = arith.constant 0 : index
    %c0_151 = arith.constant 0 : index
    %161 = vector.load %arg16[%c0_149, %c0_150, %c0_151] : memref<3x8x16xf32, #tpu.memory_space<vmem>>, vector<1x8x16xf32>
    %162 = vector.shape_cast %161 : vector<1x8x16xf32> to vector<8x16xf32>
    %c1_152 = arith.constant 1 : index
    %c0_153 = arith.constant 0 : index
    %c0_154 = arith.constant 0 : index
    %163 = vector.load %arg16[%c1_152, %c0_153, %c0_154] : memref<3x8x16xf32, #tpu.memory_space<vmem>>, vector<1x8x16xf32>
    %164 = vector.shape_cast %163 : vector<1x8x16xf32> to vector<8x16xf32>
    %c2_155 = arith.constant 2 : index
    %c0_156 = arith.constant 0 : index
    %c0_157 = arith.constant 0 : index
    %165 = vector.load %arg16[%c2_155, %c0_156, %c0_157] : memref<3x8x16xf32, #tpu.memory_space<vmem>>, vector<1x8x16xf32>
    %166 = vector.shape_cast %165 : vector<1x8x16xf32> to vector<8x16xf32>
    %167 = arith.truncf %160 : vector<8x16xf32> to vector<8x16xbf16>
    %c0_158 = arith.constant 0 : index
    %c0_159 = arith.constant 0 : index
    %168 = vector.load %arg7[%c0_158, %c0_159] : memref<16x32xbf16, #tpu.memory_space<vmem>>, vector<16x32xbf16>
    %cst_160 = arith.constant dense<0.000000e+00> : vector<8x32xf32>
    %169 = tpu.matmul %167, %168, %cst_160 {dimension_numbers = #tpu.dot_dimension_numbers<[1], [0], [0], [1], [0, 0, 1, 1], [], []>} : vector<8x16xbf16>, vector<16x32xbf16>, vector<8x32xf32> -> vector<8x32xf32>
    %c0_161 = arith.constant 0 : index
    %c0_162 = arith.constant 0 : index
    %170 = vector.load %arg9[%c0_161, %c0_162] : memref<1x32xf32, #tpu.memory_space<vmem>>, vector<1x32xf32>
    %171 = vector.broadcast %170 : vector<1x32xf32> to vector<8x32xf32>
    %172 = arith.addf %169, %171 : vector<8x32xf32>
    %173 = tpu.concatenate %162, %164, %164, %166, %166, %166 in 1 : vector<8x16xf32>, vector<8x16xf32>, vector<8x16xf32>, vector<8x16xf32>, vector<8x16xf32>, vector<8x16xf32> -> vector<8x96xf32>
    %174 = tpu.concatenate %160, %160, %162, %160, %162, %164 in 1 : vector<8x16xf32>, vector<8x16xf32>, vector<8x16xf32>, vector<8x16xf32>, vector<8x16xf32>, vector<8x16xf32> -> vector<8x96xf32>
    %175 = arith.mulf %173, %174 : vector<8x96xf32>
    %176 = arith.truncf %175 : vector<8x96xf32> to vector<8x96xbf16>
    %c0_163 = arith.constant 0 : index
    %c0_164 = arith.constant 0 : index
    %177 = vector.load %arg8[%c0_163, %c0_164] : memref<96x32xbf16, #tpu.memory_space<vmem>>, vector<96x32xbf16>
    %cst_165 = arith.constant dense<0.000000e+00> : vector<8x32xf32>
    %178 = tpu.matmul %176, %177, %cst_165 {dimension_numbers = #tpu.dot_dimension_numbers<[1], [0], [0], [1], [0, 0, 1, 1], [], []>} : vector<8x96xbf16>, vector<96x32xbf16>, vector<8x32xf32> -> vector<8x32xf32>
    %179 = arith.addf %172, %178 : vector<8x32xf32>
    %cst_166 = arith.constant 0.000000e+00 : f32
    %180 = vector.broadcast %cst_166 : f32 to vector<8x32xf32>
    %181 = arith.maximumf %179, %180 : vector<8x32xf32>
    %c0_167 = arith.constant 0 : index
    %c0_168 = arith.constant 0 : index
    %182 = vector.load %arg10[%c0_167, %c0_168] : memref<1x32xbf16, #tpu.memory_space<vmem>>, vector<1x32xbf16>
    %183 = arith.truncf %181 : vector<8x32xf32> to vector<8x32xbf16>
    %cst_169 = arith.constant dense<0.000000e+00> : vector<1x8xf32>
    %184 = tpu.matmul %182, %183, %cst_169 {dimension_numbers = #tpu.dot_dimension_numbers<[1], [1], [0], [0], [0, 0, 1, 0], [], []>} : vector<1x32xbf16>, vector<8x32xbf16>, vector<1x8xf32> -> vector<1x8xf32>
    %c0_170 = arith.constant 0 : index
    %c0_171 = arith.constant 0 : index
    %185 = vector.load %arg11[%c0_170, %c0_171] : memref<1x1xf32, #tpu.memory_space<vmem>>, vector<1x1xf32>
    %186 = vector.broadcast %185 : vector<1x1xf32> to vector<1x8xf32>
    %187 = arith.addf %184, %186 : vector<1x8xf32>
    %188 = arith.negf %187 : vector<1x8xf32>
    %189 = math.exp %188 : vector<1x8xf32>
    %cst_172 = arith.constant 1.000000e+00 : f32
    %190 = vector.broadcast %cst_172 : f32 to vector<1x8xf32>
    %191 = arith.addf %190, %189 : vector<1x8xf32>
    %192 = arith.divf %190, %191 : vector<1x8xf32>
    %c0_173 = arith.constant 0 : index
    %c0_174 = arith.constant 0 : index
    %193 = vector.load %arg15[%c0_173, %c0_174] : memref<1x8xf32, #tpu.memory_space<vmem>>, vector<1x8xf32>
    tpu.vector_store %arg15[%c0_173, %c0_174], %192 {strides = array<i32>} : memref<1x8xf32, #tpu.memory_space<vmem>>, vector<1x8xf32>,
    return
  }
  func.func @transform_0(%arg0: i32) -> (i32, i32) {
    %c0_i32 = arith.constant 0 : i32
    %c0_i32_0 = arith.constant 0 : i32
    return %c0_i32, %arg0 : i32, i32
  }
  func.func @transform_1(%arg0: i32) -> (i32, i32) {
    %c0_i32 = arith.constant 0 : i32
    %c0_i32_0 = arith.constant 0 : i32
    return %arg0, %c0_i32 : i32, i32
  }
  func.func @transform_2(%arg0: i32) -> (i32, i32) {
    %c0_i32 = arith.constant 0 : i32
    %c0_i32_0 = arith.constant 0 : i32
    %c0_i32_1 = arith.constant 0 : i32
    return %c0_i32, %c0_i32_0 : i32, i32
  }
  func.func @transform_3(%arg0: i32) -> (i32, i32) {
    %c0_i32 = arith.constant 0 : i32
    %c0_i32_0 = arith.constant 0 : i32
    %c0_i32_1 = arith.constant 0 : i32
    return %c0_i32, %c0_i32_0 : i32, i32
  }
  func.func @transform_4(%arg0: i32) -> (i32, i32) {
    %c0_i32 = arith.constant 0 : i32
    %c0_i32_0 = arith.constant 0 : i32
    %c0_i32_1 = arith.constant 0 : i32
    return %c0_i32, %c0_i32_0 : i32, i32
  }
  func.func @transform_5(%arg0: i32) -> (i32, i32) {
    %c0_i32 = arith.constant 0 : i32
    %c0_i32_0 = arith.constant 0 : i32
    %c0_i32_1 = arith.constant 0 : i32
    return %c0_i32, %c0_i32_0 : i32, i32
  }
  func.func @transform_6(%arg0: i32) -> (i32, i32) {
    %c0_i32 = arith.constant 0 : i32
    %c0_i32_0 = arith.constant 0 : i32
    %c0_i32_1 = arith.constant 0 : i32
    return %c0_i32, %c0_i32_0 : i32, i32
  }
  func.func @transform_7(%arg0: i32) -> (i32, i32) {
    %c0_i32 = arith.constant 0 : i32
    %c0_i32_0 = arith.constant 0 : i32
    %c0_i32_1 = arith.constant 0 : i32
    return %c0_i32, %c0_i32_0 : i32, i32
  }
  func.func @transform_8(%arg0: i32) -> (i32, i32) {
    %c0_i32 = arith.constant 0 : i32
    %c0_i32_0 = arith.constant 0 : i32
    %c0_i32_1 = arith.constant 0 : i32
    return %c0_i32, %c0_i32_0 : i32, i32
  }
  func.func @transform_9(%arg0: i32) -> (i32, i32) {
    %c0_i32 = arith.constant 0 : i32
    %c0_i32_0 = arith.constant 0 : i32
    %c0_i32_1 = arith.constant 0 : i32
    return %c0_i32, %c0_i32_0 : i32, i32
  }
  func.func @transform_10(%arg0: i32) -> (i32, i32) {
    %c0_i32 = arith.constant 0 : i32
    %c0_i32_0 = arith.constant 0 : i32
    %c0_i32_1 = arith.constant 0 : i32
    return %c0_i32, %c0_i32_0 : i32, i32
  }
  func.func @transform_11(%arg0: i32) -> (i32, i32) {
    %c0_i32 = arith.constant 0 : i32
    %c0_i32_0 = arith.constant 0 : i32
    %c0_i32_1 = arith.constant 0 : i32
    return %c0_i32, %c0_i32_0 : i32, i32
  }
  func.func @transform_12(%arg0: i32) -> (i32, i32) {
    %c0_i32 = arith.constant 0 : i32
    %c0_i32_0 = arith.constant 0 : i32
    %c0_i32_1 = arith.constant 0 : i32
    return %c0_i32, %c0_i32_0 : i32, i32
  }
  func.func @transform_13(%arg0: i32) -> (i32, i32) {
    %c0_i32 = arith.constant 0 : i32
    %c0_i32_0 = arith.constant 0 : i32
    %c0_i32_1 = arith.constant 0 : i32
    return %c0_i32, %c0_i32_0 : i32, i32
  }
  func.func @transform_14(%arg0: i32) -> (i32, i32) {
    %c0_i32 = arith.constant 0 : i32
    %c0_i32_0 = arith.constant 0 : i32
    return %c0_i32, %arg0 : i32, i32
  }
}

</mosaic_0001>

<bundles_post_ra>
// kernel: tpu_custom_call.1
= control target key start
LH: loop header
LB: loop body
LE: loop exit
PB: predicated region body
PF: predicated region fallthrough
CT: control target
= control target key end

     0   :  { %s1075_s0 = inlined_call_operand.vmem [shape: s32[3,8], index: 0, kind: input, shape index: {}]   ;;  %s1076_s1 = inlined_call_operand.vmem [shape: f32[8,16], index: 1, kind: input, shape index: {}]   ;;  %s1077_s2 = inlined_call_operand.vmem [shape: bf16[16,32], index: 2, kind: input, shape index: {}]   ;;  %s1078_s3 = inlined_call_operand.vmem [shape: f32[1,32], index: 3, kind: input, shape index: {}]   ;;  %s1079_s4 = inlined_call_operand.vmem [shape: bf16[32,16], index: 4, kind: input, shape index: {}]   ;;  %s1080_s5 = inlined_call_operand.vmem [shape: f32[1,16], index: 5, kind: input, shape index: {}]   ;;  %s1081_s6 = inlined_call_operand.vmem [shape: bf16[16,32], index: 6, kind: input, shape index: {}]   ;;  %s1082_s7 = inlined_call_operand.vmem [shape: bf16[96,32], index: 7, kind: input, shape index: {}]   ;;  %s1083_s8 = inlined_call_operand.vmem [shape: f32[1,32], index: 8, kind: input, shape index: {}]   ;;  %s1084_s9 = inlined_call_operand.vmem [shape: bf16[1,32], index: 9, kind: input, shape index: {}]   ;;  %s1085_s10 = inlined_call_operand.<no memory space> [shape: f32[1,1], index: 10, kind: input, shape index: {}]   ;;  %s1086_s11 = inlined_call_operand.vmem [shape: f32[100,16], index: 11, kind: input, shape index: {}]   ;;  %s1087_s12 = inlined_call_operand.vmem [shape: f32[80,16], index: 12, kind: input, shape index: {}]   ;;  %s1088_s13 = inlined_call_operand.vmem [shape: f32[60,16], index: 13, kind: input, shape index: {}]   ;;  %s1089_s14 = inlined_call_operand.hbm [shape: f32[1,8], index: 14, kind: output, shape index: {}]  }
   0x1   :  { %1091 = sst [smem:[#allocation10_spill]] %s1084_s9  ;;  %v19_v0 = vstv %s1085_s10 }
   0x2   :  { %1092 = sst [smem:[#allocation11_spill]] %s1089_s14  ;;  %20 = vst [vmem:[#allocation3] sm:$0x1] %v19_v0 }
   0x3   :  { %21 = vsyncpa [#allocation6], 0 }
   0x4   :  { %22 = vsyncpa [#allocation5], 0  ;;  %s29_s17 = sshll.u32 %s1075_s0, 4  ;;  %s30_s17 = int_to_ptr.vmem [resolvable:$true] %s29_s17 }
   0x5   :  { %s734_s18 = scalar_lea.vmem %s30_s17, 64  ;;  %p739_p1 = scmp.lt.s32.totalorder %s30_s17, %s30_s17 }
   0x6   :  { %p735_p0 = scmp.ne.s32.totalorder %s30_s17, %s734_s18  ;;  %p740_p2 = scmp.lt.s32.totalorder %s734_s18, %s734_s18 }
   0x8   :  { %p741_p3 = por %p740_p2, %p739_p1 }
   0xa   :  { %p742_p4 = pnand %p741_p3, %p735_p0 }
   0xc   :  { %745 = shalt.err (!%p742_p4)
}
   0xd   :  { %s772_s19 = smov [#allocation4]  }
   0xe   :  { %32 = dma.vmem_to_smem %s30_s17, 64, %s772_s19, [#allocation6]  }
   0xf   :  { %768 = dma.done.wait [#allocation6], 64  }
  0x10   :  { %769 = vsyncadd [#allocation6], 4294967232 }
  0x11   :  { %62 = sfence }
  0x12   :  { %v720_v1 = vld [vmem:[%s1077_s2] sm:$0xff]   ;;  %v773_v2 = vmov 0.0   ;;  %vm180_vm0 = vcmask 130048   ;;  %vm774_vm1 = vmmov 0   ;;  %v722_v6 = vld [vmem:[%s1079_s4 + $0x8] sm:$0xff]   ;;  %s611_s24 = sld [smem:[#allocation4 + $0x80]] }
  0x13   :  { %662 = vmatprep.subr.bf16.mxu1 %v773_v2  ;;  %v163_v3 = vld [vmem:[%s1076_s1] sm:$0xff]  ;;  %676 = vmatprep.subr.bf16.mxu0 %v773_v2  ;;  %s612_s25 = sld [smem:[#allocation4 + $0x81]]  ;;  %s613_s26 = sld [smem:[#allocation4 + $0x82]]  ;;  %vm67_vm2 = vcmask 122880   ;;  %vm249_vm3 = vcmask 261120   ;;  %v725_v52 = vld [vmem:[%s1082_s7 + $0x8] sm:$0xff]  }
  0x14   :  { %663 = vmatpush3.bf16.msra.mxu1 %v720_v1  ;;  %664 = vmatprep.mubr.msk.bf16.mxu1 %vm774_vm1, %v773_v2  ;;  %v164_v4 = vpack.c.bf16 %v163_v3, %v163_v3  ;;  %v721_v5 = vld [vmem:[%s1079_s4] sm:$0xff]   ;;  %s614_s27 = sld [smem:[#allocation4 + $0x83]]  ;;  %s615_s28 = sld [smem:[#allocation4 + $0x84]]  ;;  %v726_v53 = vld [vmem:[%s1082_s7 + $0x10] sm:$0xff]   ;;  %v727_v54 = vld [vmem:[%s1082_s7 + $0x18] sm:$0xff]   ;;  %vm375_vm4 = vcmask 392192  }
  0x15   :  { %668 = vmatprep.subr.bf16.mxu1 %v773_v2  ;;  %678 = vmatprep.mubr.msk.bf16.mxu0 %vm774_vm1, %v773_v2  ;;  %s616_s29 = sld [smem:[#allocation4 + $0x85]]  ;;  %s617_s30 = sld [smem:[#allocation4 + $0x86]]  ;;  %v627_v34 = vld [vmem:[%s1078_s3] ss:$0 sm:$0xff]  ;;  %v729_v56 = vld [vmem:[%s1082_s7 + $0x28] sm:$0xff]   ;;  %vm377_vm5 = vcmask 523264  }
  0x16   :  { %s618_s15 = sld [smem:[#allocation4 + $0x87]]  ;;  %s887_s16 = sld [smem:[#allocation4 + $0x100]]  ;;  %v723_v42 = vld [vmem:[%s1081_s6] sm:$0xff]   ;;  %vm379_vm6 = vcmask 654336   ;;  %vm453_vm7 = vcmask 785408   ;;  %vm563_vm8 = vcmask 57344  }
  0x17   :  { %665 = vmatmul.mubr.msk.bf16.vlgmr.msra.gmra.mrb[0].mxu1 %vm180_vm0, %v164_v4  ;;  %s889_s17 = sld [smem:[#allocation4 + $0x101]]  ;;  %s891_s18 = sld [smem:[#allocation4 + $0x102]]  ;;  %677 = vmatpush3.bf16.msra.mxu0 %v723_v42  ;;  %v630_v43 = vld [vmem:[%s1080_s5] ss:$0 sm:$0xff] }
  0x18   :  { %672 = vmatprep.mubr.msk.bf16.mxu1 %vm774_vm1, %v773_v2  ;;  %669 = vmatpush3.bf16.msra.mxu1 %v721_v5  ;;  %s98_s10 = scalar_lea.vmem %s1087_s12, %s611_s24  ;;  %s622_s2 = sld [smem:[#allocation4 + $0x103]]  ;;  %v724_v50 = vld [vmem:[%s1082_s7] sm:$0xff]  }
  0x19   :  { %670 = vmatprep.subr.bf16.mxu1 %v773_v2  ;;  %s103_s21 = scalar_lea.vmem %s1087_s12, %s612_s25  ;;  %v99_v7 = vld [vmem:[%s98_s10] sm:$0x1]  ;;  %s107_s22 = scalar_lea.vmem %s1087_s12, %s613_s26  ;;  %682 = vmatprep.subr.bf16.mxu0 %v773_v2 }
  0x1a   :  { %v104_v8 = vld [vmem:[%s103_s21] sm:$0x1]  ;;  %s111_s9 = scalar_lea.vmem %s1087_s12, %s614_s27  ;;  %101 = vst.msk [vmem:[#allocation2 + $0x8] sm:$0x1] %vm67_vm2, %v99_v7  ;;  %s115_s25 = scalar_lea.vmem %s1087_s12, %s615_s28 }
  0x1b   :  { %105 = vst.msk [vmem:[#allocation2 + $0x9] sm:$0x1] %vm67_vm2, %v104_v8  ;;  %v108_v9 = vld [vmem:[%s107_s22] sm:$0x1]  ;;  %s119_s20 = scalar_lea.vmem %s1087_s12, %s616_s29  ;;  %s623_s19 = sld [smem:[#allocation4 + $0x104]] }
  0x1c   :  { %671 = vmatpush3.bf16.msra.mxu1 %v722_v6  ;;  %v112_v10 = vld [vmem:[%s111_s9] sm:$0x1]  ;;  %109 = vst.msk [vmem:[#allocation2 + $0xa] sm:$0x1] %vm67_vm2, %v108_v9  ;;  %s123_s9 = scalar_lea.vmem %s1087_s12, %s617_s30  ;;  %s127_s28 = scalar_lea.vmem %s1087_s12, %s618_s15 }
  0x1d   :  { %698 = vmatprep.subr.bf16.mxu1 %v773_v2  ;;  %113 = vst.msk [vmem:[#allocation2 + $0xb] sm:$0x1] %vm67_vm2, %v112_v10  ;;  %v116_v11 = vld [vmem:[%s115_s25] sm:$0x1]  ;;  %s131_s1 = scalar_lea.vmem %s1088_s13, %s887_s16  ;;  %s136_s12 = scalar_lea.vmem %s1088_s13, %s889_s17 }
  0x1e   :  { %v120_v12 = vld [vmem:[%s119_s20] sm:$0x1]  ;;  %117 = vst.msk [vmem:[#allocation2 + $0xc] sm:$0x1] %vm67_vm2, %v116_v11  ;;  %s140_s24 = scalar_lea.vmem %s1088_s13, %s891_s18  ;;  %s624_s16 = sld [smem:[#allocation4 + $0x105]] }
  0x1f   :  { %121 = vst.msk [vmem:[#allocation2 + $0xd] sm:$0x1] %vm67_vm2, %v120_v12  ;;  %v124_v13 = vld [vmem:[%s123_s9] sm:$0x1]  ;;  %s625_s25 = sld [smem:[#allocation4 + $0x106]]  ;;  %s626_s4 = sld [smem:[#allocation4 + $0x107]] }
  0x20   :  { %v128_v14 = vld [vmem:[%s127_s28] sm:$0x1]  ;;  %125 = vst.msk [vmem:[#allocation2 + $0xe] sm:$0x1] %vm67_vm2, %v124_v13  ;;  %s144_s17 = scalar_lea.vmem %s1088_s13, %s622_s2  ;;  %s64_s14 = sld [smem:[#allocation4]] }
  0x21   :  { %129 = vst.msk [vmem:[#allocation2 + $0xf] sm:$0x1] %vm67_vm2, %v128_v14  ;;  %v132_v15 = vld [vmem:[%s131_s1] sm:$0x1]  ;;  %s943_s26 = sld [smem:[#allocation4 + $0x1]]  ;;  %s945_s18 = sld [smem:[#allocation4 + $0x2]] }
  0x22   :  { %134 = vst.msk [vmem:[#allocation2 + $0x10] sm:$0x1] %vm67_vm2, %v132_v15  ;;  %v137_v16 = vld [vmem:[%s136_s12] sm:$0x1]  ;;  %s148_s0 = scalar_lea.vmem %s1088_s13, %s623_s19  ;;  %s953_s28 = sld [smem:[#allocation4 + $0x3]] }
  0x23   :  { %v141_v17 = vld [vmem:[%s140_s24] sm:$0x1]  ;;  %138 = vst.msk [vmem:[#allocation2 + $0x11] sm:$0x1] %vm67_vm2, %v137_v16  ;;  %s775_s29 = smov 16   ;;  %s776_s15 = smov 32  }
  0x24   :  { %142 = vst.msk [vmem:[#allocation2 + $0x12] sm:$0x1] %vm67_vm2, %v141_v17  ;;  %v145_v18 = vld [vmem:[%s144_s17] sm:$0x1]  ;;  %s152_s2 = scalar_lea.vmem %s1088_s13, %s624_s16  ;;  %s607_s16 = sld [smem:[#allocation4 + $0x4]]  ;;  %v780_v16 = vmov 0  }
  0x25   :  { %146 = vst.msk [vmem:[#allocation2 + $0x13] sm:$0x1] %vm67_vm2, %v145_v18  ;;  %v149_v20 = vld [vmem:[%s148_s0] sm:$0x1]  ;;  %s156_s12 = scalar_lea.vmem %s1088_s13, %s625_s25  ;;  %s160_s19 = scalar_lea.vmem %s1088_s13, %s626_s4  ;;  %v501_v15 = vld [vmem:[#allocation3] sm:$0x1]  ;;  %719 = vset.pattern.permute.xlu0 %v780_v16 }
  0x26   :  { %150 = vst.msk [vmem:[#allocation2 + $0x14] sm:$0x1] %vm67_vm2, %v149_v20  ;;  %v153_v21 = vld [vmem:[%s152_s2] sm:$0x1]  ;;  %s608_s25 = sld [smem:[#allocation4 + $0x5]]  ;;  %s609_s10 = sld [smem:[#allocation4 + $0x6]] }
  0x27   :  { %v157_v22 = vld [vmem:[%s156_s12] sm:$0x1]  ;;  %154 = vst.msk [vmem:[#allocation2 + $0x15] sm:$0x1] %vm67_vm2, %v153_v21  ;;  %s65_s9 = scalar_lea.vmem %s1086_s11, %s64_s14  ;;  %s610_s27 = sld [smem:[#allocation4 + $0x7]] }
  0x28   :  { %v947_v19 = vld [vmem:[#allocation2 + $0x8] sm:$0xff]  ;;  %158 = vst.msk [vmem:[#allocation2 + $0x16] sm:$0x1] %vm67_vm2, %v157_v22  ;;  %v161_v23 = vld [vmem:[%s160_s19] sm:$0x1]  ;;  %s70_s13 = scalar_lea.vmem %s1086_s11, %s943_s26  ;;  %s74_s2 = scalar_lea.vmem %s1086_s11, %s945_s18 }
  0x29   :  { %357 = vrot.lane.b32.xlu0 %v947_v19, %s775_s29  ;;  %360 = vrot.lane.b32.xlu1 %v947_v19, %s776_s15  ;;  %162 = vst.msk [vmem:[#allocation2 + $0x17] sm:$0x1] %vm67_vm2, %v161_v23  ;;  %v66_v24 = vld [vmem:[%s65_s9] sm:$0x1]  ;;  %s78_s12 = scalar_lea.vmem %s1086_s11, %s953_s28  ;;  %s1093_s17 = sld [smem:[#allocation10_spill]] }
  0x2a   :  { %68 = vst.msk [vmem:[#allocation2] sm:$0x1] %vm67_vm2, %v66_v24  ;;  %v71_v25 = vld [vmem:[%s70_s13] sm:$0x1]  ;;  %s82_s23 = scalar_lea.vmem %s1086_s11, %s607_s16  ;;  %s777_s16 = smov 48  }
  0x2b   :  { %v75_v26 = vld [vmem:[%s74_s2] sm:$0x1]  ;;  %72 = vst.msk [vmem:[#allocation2 + $0x1] sm:$0x1] %vm67_vm2, %v71_v25  ;;  %s779_s2 = smov 80  }
  0x2c   :  { %76 = vst.msk [vmem:[#allocation2 + $0x2] sm:$0x1] %vm67_vm2, %v75_v26  ;;  %v79_v27 = vld [vmem:[%s78_s12] sm:$0x1]  ;;  %s86_s19 = scalar_lea.vmem %s1086_s11, %s608_s25  ;;  %s90_s28 = scalar_lea.vmem %s1086_s11, %s609_s10 }
  0x2d   :  { %80 = vst.msk [vmem:[#allocation2 + $0x3] sm:$0x1] %vm67_vm2, %v79_v27  ;;  %v83_v28 = vld [vmem:[%s82_s23] sm:$0x1]  ;;  %s94_s21 = scalar_lea.vmem %s1086_s11, %s610_s27  ;;  %s778_s25 = smov 64   ;;  %v507_v27 = vlaneseq }
  0x2e   :  { %84 = vst.msk [vmem:[#allocation2 + $0x4] sm:$0x1] %vm67_vm2, %v83_v28  ;;  %v87_v29 = vld [vmem:[%s86_s19] sm:$0x1] }
  0x2f   :  { %v91_v30 = vld [vmem:[%s90_s28] sm:$0x1]  ;;  %88 = vst.msk [vmem:[#allocation2 + $0x5] sm:$0x1] %vm67_vm2, %v87_v29  ;;  %v508_v28 = vshrl.u32 %v507_v27, 7 }
  0x30   :  { %v296_v31 = vld [vmem:[#allocation2 + $0x10] sm:$0xff]  ;;  %92 = vst.msk [vmem:[#allocation2 + $0x6] sm:$0x1] %vm67_vm2, %v91_v30  ;;  %v95_v32 = vld [vmem:[%s94_s21] sm:$0x1] }
  0x31   :  { %364 = vrot.lane.b32.xlu0 %v296_v31, %s777_s16  ;;  %96 = vst.msk [vmem:[#allocation2 + $0x7] sm:$0x1] %vm67_vm2, %v95_v32  ;;  %v728_v55 = vld [vmem:[%s1082_s7 + $0x20] sm:$0xff]   ;;  %v509_v29 = vsub.s32 0, %v508_v28 }
  0x32   :  { %v634_v17 = vld [vmem:[%s1083_s8] ss:$0 sm:$0xff]  ;;  %s781_s8 = smov [#allocation7]  }
  0x33   :  { %v499_v26 = vld [vmem:[%s1093_s17] sm:$0x1]  ;;  %s571_s28 = sshll.u32 %s781_s8, 4  ;;  %s572_s28 = int_to_ptr.vmem [resolvable:$true] %s571_s28 }
  0x34   :  { %s746_s9 = scalar_lea.vmem %s572_s28, 16  ;;  %s750_s0 = scalar_lea.vmem %s572_s28, 32 }
  0x35   :  { %367 = vrot.lane.b32.xlu0 %v296_v31, %s778_s25  ;;  %p747_p5 = scmp.ne.s32.totalorder %s572_s28, %s746_s9  ;;  %p751_p6 = scmp.lt.s32.totalorder %s572_s28, %s572_s28 }
  0x36   :  { %p752_p7 = scmp.lt.s32.totalorder %s750_s0, %s746_s9 }
  0x38   :  { %v294_v33 = vld [vmem:[#allocation2] sm:$0xff]  ;;  %p753_p8 = por %p752_p7, %p751_p6 }
  0x39   :  { %386 = vrot.lane.b32.xlu1 %v294_v33, %s776_s15 }
  0x3a   :  { %p754_p9 = pnand %p753_p8, %p747_p5 }
  0x3d   :  { %392 = vrot.lane.b32.xlu1 %v294_v33, %s778_s25 }
  0x9b   :  { %v361_v57 = vpop.permute.xlu1 %360  ;;  %v358_v58 = vpop.permute.xlu0 %357 }
  0x9c   :  { %v373_v62 = vsel %vm180_vm0, %v294_v33, %v358_v58 }
  0x9d   :  { %v374_v0 = vsel %vm249_vm3, %v373_v62, %v361_v57 }
  0xa3   :  { %v365_v60 = vpop.permute.xlu0 %364 }
  0xa4   :  { %v376_v4 = vsel %vm375_vm4, %v374_v0, %v365_v60 }
  0xa7   :  { %v368_v63 = vpop.permute.xlu0 %367 }
  0xa8   :  { %v378_v7 = vsel %vm377_vm5, %v376_v4, %v368_v63 }
  0xab   :  { %v387_v59 = vpop.permute.xlu1 %386 }
  0xaf   :  { %v393_v61 = vpop.permute.xlu1 %392 }
  0xea   :  { %v218_v35 = vpop.f32.mrb[0].mxu1 }
  0xeb   :  { %v219_v36 = vadd.f32 %v627_v34, %v218_v35  ;;  %v666_v37 = vpop.f32.mrb[1].mxu1 }
  0xec   :  { %v221_v38 = vpop.f32.mrb[2].mxu1 }
  0xed   :  { %v224_v39 = vmax.f32 %v219_v36, 0.0  ;;  %v667_v40 = vpop.f32.mrb[3].mxu1 }
  0xef   :  { %v225_v41 = vpack.c.bf16 %v224_v39, %v224_v39 }
  0xf1   :  { %673 = vmatmul.mubr.msk.bf16.vlgmr.msra.gmra.mrb[4].mxu1 %vm249_vm3, %v225_v41 }
  0xf2   :  { %700 = vmatprep.mubr.msk.bf16.mxu1 %vm774_vm1, %v773_v2 }
 0x1c4   :  { %v287_v44 = vpop.f32.mrb[4].mxu1 }
 0x1c5   :  { %v288_v45 = vadd.f32 %v630_v43, %v287_v44  ;;  %v674_v46 = vpop.f32.mrb[5].mxu1 }
 0x1c6   :  { %v290_v47 = vpop.f32.mrb[6].mxu1 }
 0x1c7   :  { %v293_v48 = vmax.f32 %v288_v45, 0.0  ;;  %v675_v49 = vpop.f32.mrb[7].mxu1 }
 0x1c9   :  { %382 = vrot.lane.b32.xlu0 %v293_v48, %s775_s29  ;;  %389 = vrot.lane.b32.xlu1 %v293_v48, %s777_s16  ;;  %v297_v51 = vpack.c.bf16 %v293_v48, %v293_v48 }
 0x1cb   :  { %679 = vmatmul.mubr.msk.bf16.vlgmr.msra.gmra.mrb[0].mxu0 %vm180_vm0, %v297_v51 }
 0x1cc   :  { %683 = vmatpush3.bf16.msra.mxu0 %v724_v50  ;;  %694 = vmatprep.mubr.msk.bf16.mxu0 %vm774_vm1, %v773_v2 }
 0x1cd   :  { %370 = vrot.lane.b32.xlu0 %v296_v31, %s779_s2  ;;  %395 = vrot.lane.b32.xlu1 %v947_v19, %s779_s2 }
 0x1ce   :  { %684 = vmatprep.subr.bf16.mxu0 %v773_v2 }
 0x1d0   :  { %685 = vmatpush3.bf16.msra.mxu0 %v725_v52 }
 0x1d1   :  { %686 = vmatprep.subr.bf16.mxu0 %v773_v2  ;;  %504 = vperm.xlu0 %719, %v501_v15  }
 0x1d4   :  { %687 = vmatpush3.bf16.msra.mxu0 %v726_v53 }
 0x1d5   :  { %688 = vmatprep.subr.bf16.mxu0 %v773_v2 }
 0x1d8   :  { %689 = vmatpush3.bf16.msra.mxu0 %v727_v54 }
 0x1d9   :  { %690 = vmatprep.subr.bf16.mxu0 %v773_v2 }
 0x1dc   :  { %691 = vmatpush3.bf16.msra.mxu0 %v728_v55 }
 0x1dd   :  { %692 = vmatprep.subr.bf16.mxu0 %v773_v2 }
 0x1e0   :  { %693 = vmatpush3.bf16.msra.mxu0 %v729_v56 }
 0x23b   :  { %v383_v1 = vpop.permute.xlu0 %382  ;;  %v390_v3 = vpop.permute.xlu1 %389 }
 0x23c   :  { %v398_v5 = vsel %vm180_vm0, %v293_v48, %v383_v1 }
 0x23d   :  { %v399_v2 = vsel %vm249_vm3, %v398_v5, %v387_v59 }
 0x23e   :  { %v400_v6 = vsel %vm375_vm4, %v399_v2, %v390_v3 }
 0x23f   :  { %v371_v8 = vpop.permute.xlu0 %370  ;;  %v401_v9 = vsel %vm377_vm5, %v400_v6, %v393_v61  ;;  %v396_v10 = vpop.permute.xlu1 %395 }
 0x240   :  { %v380_v11 = vsel %vm379_vm6, %v378_v7, %v371_v8  ;;  %v402_v12 = vsel %vm379_vm6, %v401_v9, %v396_v10 }
 0x241   :  { %v403_v13 = vmul.f32 %v402_v12, %v380_v11 }
 0x243   :  { %v404_v14 = vpack.c.bf16 %v403_v13, %v403_v13 }
 0x245   :  { %695 = vmatmul.mubr.msk.bf16.vlgmr.msra.gmra.mrb[0].mxu0 %vm453_vm7, %v404_v14 }
 0x250   :  { %v505_v30 = vpop.permute.xlu0 %504 }
 0x251   :  { %v510_v31 = vrot.slane %v505_v30, %v509_v29 }
 0x318   :  { %v491_v18 = vpop.f32.mrb[0].mxu0 }
 0x319   :  { %v704_v19 = vadd.f32 %v634_v17, %v491_v18  ;;  %v696_v20 = vpop.f32.mrb[1].mxu0 }
 0x31a   :  { %v494_v21 = vpop.f32.mrb[2].mxu0 }
 0x31b   :  { %v498_v22 = vmax.f32 %v704_v19, 0.0  ;;  %v697_v23 = vpop.f32.mrb[3].mxu0 }
 0x31d   :  { %v500_v24 = vpack.c.bf16 %v498_v22, %v498_v22 }
 0x31f   :  { %v515_v25 = vsel %vm249_vm3, %v500_v24, 0 }
 0x320   :  { %699 = vmatpush3.bf16.xpose.msra.mxu1 %v515_v25 }
 0x327   :  { %701 = vmatmul.mubr.msk.bf16.vlgmr.msra.gmra.mrb[8].mxu1 %vm249_vm3, %v499_v26 }
 0x3fa   :  { %v551_v32 = vpop.f32.mrb[8].mxu1 }
 0x3fb   :  { %v552_v33 = vadd.f32 %v551_v32, %v510_v31  ;;  %v702_v34 = vpop.f32.mrb[9].mxu1 }
 0x3fc   :  { %v554_v35 = vpop.f32.mrb[10].mxu1 }
 0x3fd   :  { %v645_v36 = vmul.f32 -1.442695, %v552_v33  ;;  %v703_v37 = vpop.f32.mrb[11].mxu1 }
 0x3ff   :  { %730 = vpow2.f32 %v645_v36 }
 0x409   :  { %v731_v38 = vpop.eup %730 }
 0x40a   :  { %v560_v39 = vadd.f32 1.0, %v731_v38 }
 0x40c   :  { %732 = vrcp.f32 %v560_v39 }
 0x416   :  { %v733_v40 = vpop.eup %732 }
 0x417   :  { %564 = vst.msk [vmem:[#allocation7] sm:$0x1] %vm563_vm8, %v733_v40 }
 0x418   :  { %757 = shalt.err (!%p754_p9)
}
 0x419   :  { %s1094_s25 = sld [smem:[#allocation11_spill]] }
 0x41f   :  { %s758_s10 = scalar_lea.hbm %s1094_s25, 16 }
 0x420   :  { %p759_p10 = scmp.ne.s32.totalorder %s1094_s25, %s758_s10  ;;  %p762_p11 = scmp.lt.u32.totalorder %s758_s10, %s1094_s25 }
 0x422   :  { %p764_p12 = pnand %p762_p11, %p759_p10 }
 0x424   :  { %767 = shalt.err (!%p764_p12)
}
 0x425   :  { %574 = dma.vmem_to_hbm [thread:$0]  %s572_s28, 16, %s1094_s25, [#allocation5]  }
 0x426   :  { %770 = dma.done.wait [#allocation5], 16  }
 0x427   :  { %771 = vsyncadd [#allocation5], 4294967280 }
 0x428   :  { %578 = vsyncpa [#allocation5], 1 }
 0x429   :  { %579 = vsyncpa [#allocation6], 1 }

</bundles_post_ra>
